<compile_context>
chip_gen: v7x
topology: tpu7x:2x2x1
jax: 0.10.0
libtpu: 0.0.40
codegen_flags: <defaults>
</compile_context>

<pallas_src>
import jax
import jax.numpy as jnp
from jax.experimental import pallas as pl
from jax.experimental.pallas import tpu as pltpu


def _round_up(n: int, m: int) -> int:
    return ((n + m - 1) // m) * m


def qnetwork_kernel(x_ref, w1_ref, b1_ref, w2_ref, b2_ref, w3_ref, b3_ref, o_ref):
    """relu(relu(x@W1+b1)@W2+b2)@W3+b3 for one batch tile; weights VMEM-resident."""
    cdt = w1_ref.dtype  # MXU operand dtype (bf16 or f32)

    x = x_ref[...].astype(cdt)  # cast streamed f32 tile in-VMEM (no wrapper pre-pass)
    h1 = jnp.dot(x, w1_ref[...], preferred_element_type=jnp.float32) + b1_ref[...]
    h1 = jnp.maximum(h1, 0.0)

    h2 = jnp.dot(h1.astype(cdt), w2_ref[...],
                 preferred_element_type=jnp.float32) + b2_ref[...]
    h2 = jnp.maximum(h2, 0.0)

    out = jnp.dot(h2.astype(cdt), w3_ref[...],
                  preferred_element_type=jnp.float32) + b3_ref[...]
    o_ref[...] = out.astype(o_ref.dtype)


def pack_params(params, compute_dtype=jnp.bfloat16):
    """One-time packing: transpose to (in, out); zero-pad ONLY the hidden dim to
    a multiple of 128 (padded lanes stay exactly zero through the ReLUs); cast
    MXU operands to compute_dtype; biases stay f32 (added to the f32 acc)."""
    w1, b1 = params["w1"], params["b1"]   # (H, D), (H,)
    w2, b2 = params["w2"], params["b2"]   # (H, H), (H,)
    w3, b3 = params["w3"], params["b3"]   # (O, H), (O,)
    D, H, O = w1.shape[1], w1.shape[0], w3.shape[0]
    Hp = _round_up(H, 128)

    def pad_w(w_t, rows, cols):  # w_t: (in, out)
        return jnp.pad(w_t, ((0, rows - w_t.shape[0]), (0, cols - w_t.shape[1])))

    def pad_b(b, cols):
        return jnp.pad(b, (0, cols - b.shape[0])).reshape(1, cols)

    return {
        "w1": pad_w(w1.T, D, Hp).astype(compute_dtype),   # (D,  Hp)
        "w2": pad_w(w2.T, Hp, Hp).astype(compute_dtype),  # (Hp, Hp)
        "w3": pad_w(w3.T, Hp, O).astype(compute_dtype),   # (Hp, O)
        "b1": pad_b(b1, Hp).astype(jnp.float32),          # (1, Hp)
        "b2": pad_b(b2, Hp).astype(jnp.float32),          # (1, Hp)
        "b3": pad_b(b3, O).astype(jnp.float32),           # (1, O)
        "dims": (D, H, O),
        "compute_dtype": compute_dtype,
    }


def qnetwork_forward(x, packed, *, tm=None, out_dtype=None):
    """x: (B, input_dim) f32.  Returns (B, output_dim) in out_dtype
    (defaults to the packed compute dtype, e.g. bf16 on the fast path)."""
    x = x.astype(jnp.float32)
    B, D = x.shape
    D_logical, _, O = packed["dims"]
    assert D == D_logical, "input feature dim mismatch"

    w1, w2, w3 = packed["w1"], packed["w2"], packed["w3"]
    b1, b2, b3 = packed["b1"], packed["b2"], packed["b3"]
    Hp = w1.shape[1]
    cdt = packed["compute_dtype"]
    if out_dtype is None:
        out_dtype = cdt

    # Per-generation VMEM capacity (v5e/v6e: 128 MiB, v7x: 64 MiB per TC).
    try:
        vmem_cap = int(pltpu.get_tpu_info().vmem_capacity_bytes)
    except Exception:
        vmem_cap = 64 * 1024 * 1024  # conservative fallback (v7x per-TC)

    # Batch tiling: low padding, >= 2 grid steps when B >= 32 (v7x megacore).
    tile_target = 1024 if vmem_cap >= (100 << 20) else 512
    if tm is None:
        n_tiles = max(1, pl.cdiv(B, tile_target))
        if B >= 32:
            n_tiles = max(2, n_tiles)
        tm = _round_up(pl.cdiv(B, n_tiles), 16)
        if tm >= B:  # tiny batch: one full-extent block (always layout-legal)
            tm, n_tiles = B, 1
    else:
        n_tiles = pl.cdiv(B, tm)
    grid = (n_tiles,)

    # VMEM budget: sized so even the double-buffered-weights fallback fits.
    w_itemsize = jnp.dtype(cdt).itemsize
    out_itemsize = jnp.dtype(out_dtype).itemsize
    weight_bytes = (D * Hp + Hp * Hp + Hp * O) * w_itemsize
    bias_bytes = (2 * Hp + O) * 4
    stream_bytes = 2 * tm * D * 4 + 2 * tm * O * out_itemsize  # dbl-buffered x/out
    interm_bytes = 4 * tm * Hp * 4                              # h1/h2 + temps (f32)
    vmem_need = 2 * (weight_bytes + bias_bytes) + stream_bytes + interm_bytes
    vmem_limit = min(max(int(1.5 * vmem_need) + (8 << 20), 32 << 20),
                     int(0.75 * vmem_cap))

    Bp = n_tiles * tm
    flops = 2 * Bp * (D * Hp + Hp * Hp + Hp * O)
    bytes_accessed = (B * D * 4 + weight_bytes + bias_bytes + B * O * out_itemsize)

    def make_call(single_buffer_weights):
        if single_buffer_weights:
            def const_spec(shape):
                return pl.BlockSpec(shape, lambda i: (0, 0),
                                    pipeline_mode=pl.Buffered(1))
        else:
            def const_spec(shape):
                return pl.BlockSpec(shape, lambda i: (0, 0))

        return pl.pallas_call(
            qnetwork_kernel,
            out_shape=jax.ShapeDtypeStruct((B, O), out_dtype),
            grid=grid,
            in_specs=[
                pl.BlockSpec((tm, D), lambda i: (i, 0)),  # x tile (streamed f32)
                const_spec((D, Hp)),                      # W1 (VMEM resident)
                const_spec((1, Hp)),                      # b1
                const_spec((Hp, Hp)),                     # W2
                const_spec((1, Hp)),                      # b2
                const_spec((Hp, O)),                      # W3
                const_spec((1, O)),                       # b3
            ],
            out_specs=pl.BlockSpec((tm, O), lambda i: (i, 0)),  # exact logical O lanes
            compiler_params=pltpu.CompilerParams(
                dimension_semantics=("parallel",),  # batch shards across TCs on v7x
                vmem_limit_bytes=vmem_limit,
            ),
            cost_estimate=pl.CostEstimate(
                flops=flops, transcendentals=0, bytes_accessed=bytes_accessed),
        )

    args = (x, w1, b1, w2, b2, w3, b3)
    try:
        return make_call(True)(*args)
    except Exception:
        # pl.Buffered(1) unsupported in this jax build -> default double-buffering.
        return make_call(False)(*args)


def init_params(key, input_dim, hidden_dim, output_dim):
    """Deterministic synthetic init (uniform, PyTorch-style fan_in bounds)."""
    ks = jax.random.split(key, 6)

    def u(k, shape, fan_in):
        bound = 1.0 / jnp.sqrt(fan_in)
        return jax.random.uniform(k, shape, jnp.float32, -bound, bound)

    return {
        "w1": u(ks[0], (hidden_dim, input_dim), input_dim),
        "b1": u(ks[1], (hidden_dim,), input_dim),
        "w2": u(ks[2], (hidden_dim, hidden_dim), hidden_dim),
        "b2": u(ks[3], (hidden_dim,), hidden_dim),
        "w3": u(ks[4], (output_dim, hidden_dim), hidden_dim),
        "b3": u(ks[5], (output_dim,), hidden_dim),
    }


def reference_forward(x, params):
    h1 = jnp.maximum(x @ params["w1"].T + params["b1"], 0.0)
    h2 = jnp.maximum(h1 @ params["w2"].T + params["b2"], 0.0)
    return h2 @ params["w3"].T + params["b3"]


if __name__ == "__main__":
    key = jax.random.PRNGKey(0)
    k_x, k_p = jax.random.split(key)

    batch, input_dim, hidden_dim, output_dim = 2, 16, 32, 8
    params = init_params(k_p, input_dim, hidden_dim, output_dim)
    x = jax.random.normal(k_x, (batch, input_dim), jnp.float32)
    ref = reference_forward(x, params)

    # 1) f32-operand path with f32 output: tight check vs the XLA reference.
    packed_f32 = pack_params(params, compute_dtype=jnp.float32)
    out_f32 = jax.block_until_ready(
        qnetwork_forward(x, packed_f32, out_dtype=jnp.float32))
    assert out_f32.shape == (batch, output_dim)
    assert jnp.allclose(out_f32, ref, atol=1e-5, rtol=1e-5), "f32 kernel mismatch"

    # 2) bf16 MXU fast path (f32 accumulation, bf16 output): loose tolerance.
    packed_bf16 = pack_params(params, compute_dtype=jnp.bfloat16)
    out_bf16 = jax.block_until_ready(qnetwork_forward(x, packed_bf16))
    assert out_bf16.shape == (batch, output_dim)
    assert out_bf16.dtype == jnp.bfloat16
    assert jnp.allclose(out_bf16.astype(jnp.float32), ref,
                        atol=5e-2, rtol=5e-2), "bf16 kernel mismatch"

    # 3) Multi-tile path: grid=(2,) with a partial last batch tile (exercises
    #    the megacore-friendly tiling and boundary-block masking).
    batch2 = 40
    x2 = jax.random.normal(jax.random.PRNGKey(1), (batch2, input_dim), jnp.float32)
    ref2 = reference_forward(x2, params)
    out2 = jax.block_until_ready(
        qnetwork_forward(x2, packed_f32, out_dtype=jnp.float32))
    assert out2.shape == (batch2, output_dim)
    assert jnp.allclose(out2, ref2, atol=1e-5, rtol=1e-5), "multi-tile mismatch"

    print("KERNEL_OK")
</pallas_src>

<mosaic_0001>
module attributes {stable_mosaic.version = 11 : i64} {
  func.func @qnetwork_kernel(%arg0: i32, %arg1: memref<2x16xf32, #tpu.memory_space<vmem>>, %arg2: memref<16x128xf32, #tpu.memory_space<vmem>>, %arg3: memref<1x128xf32, #tpu.memory_space<vmem>>, %arg4: memref<128x128xf32, #tpu.memory_space<vmem>>, %arg5: memref<1x128xf32, #tpu.memory_space<vmem>>, %arg6: memref<128x8xf32, #tpu.memory_space<vmem>>, %arg7: memref<1x8xf32, #tpu.memory_space<vmem>>, %arg8: memref<2x8xf32, #tpu.memory_space<vmem>>) attributes {dimension_semantics = [#tpu.dimension_semantics<parallel>], iteration_bounds = array<i64: 1>, scalar_prefetch = 0 : i64, scratch_operands = 0 : i64, tpu.core_type = #tpu.core_type<tc>, window_params = [{transform_indices = @transform_0, window_bounds = array<i64: 2, 16>}, {pipeline_mode = #tpu.pipeline_mode<synchronous>, transform_indices = @transform_1, window_bounds = array<i64: 16, 128>}, {pipeline_mode = #tpu.pipeline_mode<synchronous>, transform_indices = @transform_2, window_bounds = array<i64: 1, 128>}, {pipeline_mode = #tpu.pipeline_mode<synchronous>, transform_indices = @transform_3, window_bounds = array<i64: 128, 128>}, {pipeline_mode = #tpu.pipeline_mode<synchronous>, transform_indices = @transform_4, window_bounds = array<i64: 1, 128>}, {pipeline_mode = #tpu.pipeline_mode<synchronous>, transform_indices = @transform_5, window_bounds = array<i64: 128, 8>}, {pipeline_mode = #tpu.pipeline_mode<synchronous>, transform_indices = @transform_6, window_bounds = array<i64: 1, 8>}, {transform_indices = @transform_7, window_bounds = array<i64: 2, 8>}]} {
    %c0 = arith.constant 0 : index
    %c0_0 = arith.constant 0 : index
    %0 = vector.load %arg1[%c0, %c0_0] : memref<2x16xf32, #tpu.memory_space<vmem>>, vector<2x16xf32>
    %c0_1 = arith.constant 0 : index
    %c0_2 = arith.constant 0 : index
    %1 = vector.load %arg2[%c0_1, %c0_2] : memref<16x128xf32, #tpu.memory_space<vmem>>, vector<16x128xf32>
    %cst = arith.constant dense<0.000000e+00> : vector<2x128xf32>
    %2 = tpu.matmul %0, %1, %cst {dimension_numbers = #tpu.dot_dimension_numbers<[1], [0], [0], [1], [0, 0, 1, 1], [], []>} : vector<2x16xf32>, vector<16x128xf32>, vector<2x128xf32> -> vector<2x128xf32>
    %c0_3 = arith.constant 0 : index
    %c0_4 = arith.constant 0 : index
    %3 = vector.load %arg3[%c0_3, %c0_4] : memref<1x128xf32, #tpu.memory_space<vmem>>, vector<1x128xf32>
    %4 = vector.broadcast %3 : vector<1x128xf32> to vector<2x128xf32>
    %5 = arith.addf %2, %4 : vector<2x128xf32>
    %cst_5 = arith.constant 0.000000e+00 : f32
    %6 = vector.broadcast %cst_5 : f32 to vector<2x128xf32>
    %7 = arith.maximumf %5, %6 : vector<2x128xf32>
    %c0_6 = arith.constant 0 : index
    %c0_7 = arith.constant 0 : index
    %8 = vector.load %arg4[%c0_6, %c0_7] : memref<128x128xf32, #tpu.memory_space<vmem>>, vector<128x128xf32>
    %cst_8 = arith.constant dense<0.000000e+00> : vector<2x128xf32>
    %9 = tpu.matmul %7, %8, %cst_8 {dimension_numbers = #tpu.dot_dimension_numbers<[1], [0], [0], [1], [0, 0, 1, 1], [], []>} : vector<2x128xf32>, vector<128x128xf32>, vector<2x128xf32> -> vector<2x128xf32>
    %c0_9 = arith.constant 0 : index
    %c0_10 = arith.constant 0 : index
    %10 = vector.load %arg5[%c0_9, %c0_10] : memref<1x128xf32, #tpu.memory_space<vmem>>, vector<1x128xf32>
    %11 = vector.broadcast %10 : vector<1x128xf32> to vector<2x128xf32>
    %12 = arith.addf %9, %11 : vector<2x128xf32>
    %cst_11 = arith.constant 0.000000e+00 : f32
    %13 = vector.broadcast %cst_11 : f32 to vector<2x128xf32>
    %14 = arith.maximumf %12, %13 : vector<2x128xf32>
    %c0_12 = arith.constant 0 : index
    %c0_13 = arith.constant 0 : index
    %15 = vector.load %arg6[%c0_12, %c0_13] : memref<128x8xf32, #tpu.memory_space<vmem>>, vector<128x8xf32>
    %cst_14 = arith.constant dense<0.000000e+00> : vector<2x8xf32>
    %16 = tpu.matmul %14, %15, %cst_14 {dimension_numbers = #tpu.dot_dimension_numbers<[1], [0], [0], [1], [0, 0, 1, 1], [], []>} : vector<2x128xf32>, vector<128x8xf32>, vector<2x8xf32> -> vector<2x8xf32>
    %c0_15 = arith.constant 0 : index
    %c0_16 = arith.constant 0 : index
    %17 = vector.load %arg7[%c0_15, %c0_16] : memref<1x8xf32, #tpu.memory_space<vmem>>, vector<1x8xf32>
    %18 = vector.broadcast %17 : vector<1x8xf32> to vector<2x8xf32>
    %19 = arith.addf %16, %18 : vector<2x8xf32>
    %c0_17 = arith.constant 0 : index
    %c0_18 = arith.constant 0 : index
    %20 = vector.load %arg8[%c0_17, %c0_18] : memref<2x8xf32, #tpu.memory_space<vmem>>, vector<2x8xf32>
    tpu.vector_store %arg8[%c0_17, %c0_18], %19 {strides = array<i32>} : memref<2x8xf32, #tpu.memory_space<vmem>>, vector<2x8xf32>,
    return
  }
  func.func @transform_0(%arg0: i32) -> (i32, i32) {
    %c0_i32 = arith.constant 0 : i32
    %c0_i32_0 = arith.constant 0 : i32
    return %arg0, %c0_i32 : i32, i32
  }
  func.func @transform_1(%arg0: i32) -> (i32, i32) {
    %c0_i32 = arith.constant 0 : i32
    %c0_i32_0 = arith.constant 0 : i32
    %c0_i32_1 = arith.constant 0 : i32
    return %c0_i32, %c0_i32_0 : i32, i32
  }
  func.func @transform_2(%arg0: i32) -> (i32, i32) {
    %c0_i32 = arith.constant 0 : i32
    %c0_i32_0 = arith.constant 0 : i32
    %c0_i32_1 = arith.constant 0 : i32
    return %c0_i32, %c0_i32_0 : i32, i32
  }
  func.func @transform_3(%arg0: i32) -> (i32, i32) {
    %c0_i32 = arith.constant 0 : i32
    %c0_i32_0 = arith.constant 0 : i32
    %c0_i32_1 = arith.constant 0 : i32
    return %c0_i32, %c0_i32_0 : i32, i32
  }
  func.func @transform_4(%arg0: i32) -> (i32, i32) {
    %c0_i32 = arith.constant 0 : i32
    %c0_i32_0 = arith.constant 0 : i32
    %c0_i32_1 = arith.constant 0 : i32
    return %c0_i32, %c0_i32_0 : i32, i32
  }
  func.func @transform_5(%arg0: i32) -> (i32, i32) {
    %c0_i32 = arith.constant 0 : i32
    %c0_i32_0 = arith.constant 0 : i32
    %c0_i32_1 = arith.constant 0 : i32
    return %c0_i32, %c0_i32_0 : i32, i32
  }
  func.func @transform_6(%arg0: i32) -> (i32, i32) {
    %c0_i32 = arith.constant 0 : i32
    %c0_i32_0 = arith.constant 0 : i32
    %c0_i32_1 = arith.constant 0 : i32
    return %c0_i32, %c0_i32_0 : i32, i32
  }
  func.func @transform_7(%arg0: i32) -> (i32, i32) {
    %c0_i32 = arith.constant 0 : i32
    %c0_i32_0 = arith.constant 0 : i32
    return %arg0, %c0_i32 : i32, i32
  }
}

module attributes {stable_mosaic.version = 11 : i64} {
  func.func @qnetwork_kernel(%arg0: i32, %arg1: memref<2x16xf32, #tpu.memory_space<vmem>>, %arg2: memref<16x128xf32, #tpu.memory_space<vmem>>, %arg3: memref<1x128xf32, #tpu.memory_space<vmem>>, %arg4: memref<128x128xf32, #tpu.memory_space<vmem>>, %arg5: memref<1x128xf32, #tpu.memory_space<vmem>>, %arg6: memref<128x8xf32, #tpu.memory_space<vmem>>, %arg7: memref<1x8xf32, #tpu.memory_space<vmem>>, %arg8: memref<2x8xf32, #tpu.memory_space<vmem>>) attributes {dimension_semantics = [#tpu.dimension_semantics<parallel>], iteration_bounds = array<i64: 1>, scalar_prefetch = 0 : i64, scratch_operands = 0 : i64, tpu.core_type = #tpu.core_type<tc>, window_params = [{transform_indices = @transform_0, window_bounds = array<i64: 2, 16>}, {pipeline_mode = #tpu.pipeline_mode<synchronous>, transform_indices = @transform_1, window_bounds = array<i64: 16, 128>}, {pipeline_mode = #tpu.pipeline_mode<synchronous>, transform_indices = @transform_2, window_bounds = array<i64: 1, 128>}, {pipeline_mode = #tpu.pipeline_mode<synchronous>, transform_indices = @transform_3, window_bounds = array<i64: 128, 128>}, {pipeline_mode = #tpu.pipeline_mode<synchronous>, transform_indices = @transform_4, window_bounds = array<i64: 1, 128>}, {pipeline_mode = #tpu.pipeline_mode<synchronous>, transform_indices = @transform_5, window_bounds = array<i64: 128, 8>}, {pipeline_mode = #tpu.pipeline_mode<synchronous>, transform_indices = @transform_6, window_bounds = array<i64: 1, 8>}, {transform_indices = @transform_7, window_bounds = array<i64: 2, 8>}]} {
    %c0 = arith.constant 0 : index
    %c0_0 = arith.constant 0 : index
    %0 = vector.load %arg1[%c0, %c0_0] : memref<2x16xf32, #tpu.memory_space<vmem>>, vector<2x16xf32>
    %c0_1 = arith.constant 0 : index
    %c0_2 = arith.constant 0 : index
    %1 = vector.load %arg2[%c0_1, %c0_2] : memref<16x128xf32, #tpu.memory_space<vmem>>, vector<16x128xf32>
    %cst = arith.constant dense<0.000000e+00> : vector<2x128xf32>
    %2 = tpu.matmul %0, %1, %cst {dimension_numbers = #tpu.dot_dimension_numbers<[1], [0], [0], [1], [0, 0, 1, 1], [], []>} : vector<2x16xf32>, vector<16x128xf32>, vector<2x128xf32> -> vector<2x128xf32>
    %c0_3 = arith.constant 0 : index
    %c0_4 = arith.constant 0 : index
    %3 = vector.load %arg3[%c0_3, %c0_4] : memref<1x128xf32, #tpu.memory_space<vmem>>, vector<1x128xf32>
    %4 = vector.broadcast %3 : vector<1x128xf32> to vector<2x128xf32>
    %5 = arith.addf %2, %4 : vector<2x128xf32>
    %cst_5 = arith.constant 0.000000e+00 : f32
    %6 = vector.broadcast %cst_5 : f32 to vector<2x128xf32>
    %7 = arith.maximumf %5, %6 : vector<2x128xf32>
    %c0_6 = arith.constant 0 : index
    %c0_7 = arith.constant 0 : index
    %8 = vector.load %arg4[%c0_6, %c0_7] : memref<128x128xf32, #tpu.memory_space<vmem>>, vector<128x128xf32>
    %cst_8 = arith.constant dense<0.000000e+00> : vector<2x128xf32>
    %9 = tpu.matmul %7, %8, %cst_8 {dimension_numbers = #tpu.dot_dimension_numbers<[1], [0], [0], [1], [0, 0, 1, 1], [], []>} : vector<2x128xf32>, vector<128x128xf32>, vector<2x128xf32> -> vector<2x128xf32>
    %c0_9 = arith.constant 0 : index
    %c0_10 = arith.constant 0 : index
    %10 = vector.load %arg5[%c0_9, %c0_10] : memref<1x128xf32, #tpu.memory_space<vmem>>, vector<1x128xf32>
    %11 = vector.broadcast %10 : vector<1x128xf32> to vector<2x128xf32>
    %12 = arith.addf %9, %11 : vector<2x128xf32>
    %cst_11 = arith.constant 0.000000e+00 : f32
    %13 = vector.broadcast %cst_11 : f32 to vector<2x128xf32>
    %14 = arith.maximumf %12, %13 : vector<2x128xf32>
    %c0_12 = arith.constant 0 : index
    %c0_13 = arith.constant 0 : index
    %15 = vector.load %arg6[%c0_12, %c0_13] : memref<128x8xf32, #tpu.memory_space<vmem>>, vector<128x8xf32>
    %cst_14 = arith.constant dense<0.000000e+00> : vector<2x8xf32>
    %16 = tpu.matmul %14, %15, %cst_14 {dimension_numbers = #tpu.dot_dimension_numbers<[1], [0], [0], [1], [0, 0, 1, 1], [], []>} : vector<2x128xf32>, vector<128x8xf32>, vector<2x8xf32> -> vector<2x8xf32>
    %c0_15 = arith.constant 0 : index
    %c0_16 = arith.constant 0 : index
    %17 = vector.load %arg7[%c0_15, %c0_16] : memref<1x8xf32, #tpu.memory_space<vmem>>, vector<1x8xf32>
    %18 = vector.broadcast %17 : vector<1x8xf32> to vector<2x8xf32>
    %19 = arith.addf %16, %18 : vector<2x8xf32>
    %c0_17 = arith.constant 0 : index
    %c0_18 = arith.constant 0 : index
    %20 = vector.load %arg8[%c0_17, %c0_18] : memref<2x8xf32, #tpu.memory_space<vmem>>, vector<2x8xf32>
    tpu.vector_store %arg8[%c0_17, %c0_18], %19 {strides = array<i32>} : memref<2x8xf32, #tpu.memory_space<vmem>>, vector<2x8xf32>,
    return
  }
  func.func @transform_0(%arg0: i32) -> (i32, i32) {
    %c0_i32 = arith.constant 0 : i32
    %c0_i32_0 = arith.constant 0 : i32
    return %arg0, %c0_i32 : i32, i32
  }
  func.func @transform_1(%arg0: i32) -> (i32, i32) {
    %c0_i32 = arith.constant 0 : i32
    %c0_i32_0 = arith.constant 0 : i32
    %c0_i32_1 = arith.constant 0 : i32
    return %c0_i32, %c0_i32_0 : i32, i32
  }
  func.func @transform_2(%arg0: i32) -> (i32, i32) {
    %c0_i32 = arith.constant 0 : i32
    %c0_i32_0 = arith.constant 0 : i32
    %c0_i32_1 = arith.constant 0 : i32
    return %c0_i32, %c0_i32_0 : i32, i32
  }
  func.func @transform_3(%arg0: i32) -> (i32, i32) {
    %c0_i32 = arith.constant 0 : i32
    %c0_i32_0 = arith.constant 0 : i32
    %c0_i32_1 = arith.constant 0 : i32
    return %c0_i32, %c0_i32_0 : i32, i32
  }
  func.func @transform_4(%arg0: i32) -> (i32, i32) {
    %c0_i32 = arith.constant 0 : i32
    %c0_i32_0 = arith.constant 0 : i32
    %c0_i32_1 = arith.constant 0 : i32
    return %c0_i32, %c0_i32_0 : i32, i32
  }
  func.func @transform_5(%arg0: i32) -> (i32, i32) {
    %c0_i32 = arith.constant 0 : i32
    %c0_i32_0 = arith.constant 0 : i32
    %c0_i32_1 = arith.constant 0 : i32
    return %c0_i32, %c0_i32_0 : i32, i32
  }
  func.func @transform_6(%arg0: i32) -> (i32, i32) {
    %c0_i32 = arith.constant 0 : i32
    %c0_i32_0 = arith.constant 0 : i32
    %c0_i32_1 = arith.constant 0 : i32
    return %c0_i32, %c0_i32_0 : i32, i32
  }
  func.func @transform_7(%arg0: i32) -> (i32, i32) {
    %c0_i32 = arith.constant 0 : i32
    %c0_i32_0 = arith.constant 0 : i32
    return %arg0, %c0_i32 : i32, i32
  }
}

</mosaic_0001>

<bundles_post_ra>
// kernel: tpu_custom_call.1
= control target key start
LH: loop header
LB: loop body
LE: loop exit
PB: predicated region body
PF: predicated region fallthrough
CT: control target
= control target key end

     0   :  { %12 = vsyncpa [#allocation3], 0  ;;  %s798_s0 = inlined_call_operand.vmem [shape: f32[2,16], index: 0, kind: input, shape index: {}]   ;;  %s799_s1 = inlined_call_operand.vmem [shape: f32[16,128], index: 1, kind: input, shape index: {}]   ;;  %s800_s2 = inlined_call_operand.hbm [shape: f32[1,128], index: 2, kind: input, shape index: {}]   ;;  %s801_s3 = inlined_call_operand.vmem [shape: f32[128,128], index: 3, kind: input, shape index: {}]   ;;  %s802_s4 = inlined_call_operand.hbm [shape: f32[1,128], index: 4, kind: input, shape index: {}]   ;;  %s803_s5 = inlined_call_operand.vmem [shape: f32[128,8], index: 5, kind: input, shape index: {}]   ;;  %s804_s6 = inlined_call_operand.vmem [shape: f32[1,8], index: 6, kind: input, shape index: {}]   ;;  %s805_s7 = inlined_call_operand.hbm [shape: f32[2,8], index: 7, kind: output, shape index: {}]  }
   0x1   :  { %13 = vsyncpa [#allocation6], 0 }
   0x2   :  { %14 = vsyncpa [#allocation4], 0  ;;  %s588_s24 = smov [#allocation2]   ;;  %s589_s26 = smov [#allocation5]  }
   0x3   :  { %s25_s25 = sshll.u32 %s588_s24, 4  ;;  %s37_s27 = sshll.u32 %s589_s26, 4  ;;  %s26_s25 = int_to_ptr.vmem [resolvable:$true] %s25_s25  ;;  %s38_s27 = int_to_ptr.vmem [resolvable:$true] %s37_s27 }
   0x4   :  { %s516_s30 = scalar_lea.hbm %s800_s2, 16 }
   0x5   :  { %p517_p0 = scmp.ne.s32.totalorder %s800_s2, %s516_s30  ;;  %p520_p1 = scmp.lt.u32.totalorder %s516_s30, %s800_s2 }
   0x7   :  { %p522_p2 = pnand %p520_p1, %p517_p0 }
   0x9   :  { %525 = shalt.err (!%p522_p2)
}
   0xa   :  { %s526_s12 = scalar_lea.vmem %s26_s25, 16  ;;  %s530_s13 = scalar_lea.vmem %s26_s25, 32 }
   0xb   :  { %p527_p3 = scmp.ne.s32.totalorder %s26_s25, %s526_s12  ;;  %p531_p4 = scmp.lt.s32.totalorder %s26_s25, %s26_s25 }
   0xc   :  { %p532_p5 = scmp.lt.s32.totalorder %s530_s13, %s526_s12 }
   0xe   :  { %p533_p6 = por %p532_p5, %p531_p4 }
  0x10   :  { %p534_p7 = pnand %p533_p6, %p527_p3 }
  0x12   :  { %537 = shalt.err (!%p534_p7)
}
  0x13   :  { %28 = dma.hbm_to_vmem [thread:$0]  %s800_s2, 16, %s26_s25, [#allocation3]  }
  0x14   :  { %s538_s18 = scalar_lea.hbm %s802_s4, 16 }
  0x15   :  { %p539_p8 = scmp.ne.s32.totalorder %s802_s4, %s538_s18  ;;  %p542_p9 = scmp.lt.u32.totalorder %s538_s18, %s802_s4 }
  0x17   :  { %p544_p10 = pnand %p542_p9, %p539_p8 }
  0x19   :  { %547 = shalt.err (!%p544_p10)
}
  0x1a   :  { %s548_s23 = scalar_lea.vmem %s38_s27, 16  ;;  %s552_s24 = scalar_lea.vmem %s38_s27, 32 }
  0x1b   :  { %p549_p11 = scmp.ne.s32.totalorder %s38_s27, %s548_s23  ;;  %p553_p12 = scmp.lt.s32.totalorder %s38_s27, %s38_s27 }
  0x1c   :  { %p554_p13 = scmp.lt.s32.totalorder %s552_s24, %s548_s23 }
  0x1e   :  { %p555_p0 = por %p554_p13, %p553_p12 }
  0x20   :  { %p556_p1 = pnand %p555_p0, %p549_p11 }
  0x22   :  { %559 = shalt.err (!%p556_p1)
}
  0x23   :  { %40 = dma.hbm_to_vmem [thread:$0]  %s802_s4, 16, %s38_s27, [#allocation6]  }
  0x24   :  { %582 = dma.done.wait [#allocation3], 16  }
  0x25   :  { %583 = vsyncadd [#allocation3], 4294967280 }
  0x26   :  { %584 = dma.done.wait [#allocation6], 16  }
  0x27   :  { %585 = vsyncadd [#allocation6], 4294967280  ;;  %v590_v0 = vmov 0.0|0.0   ;;  %vm591_vm0 = vmmov 0   ;;  %v592_v1 = vmov 0.0   ;;  %v52_v2 = vld [vmem:[%s799_s1] sm:$0xff] }
  0x28   :  { %459 = vmatprep.subr.bf16.mxu0 %v590_v0  ;;  %386 = vmatprep.mubr.msk.f32.mxu0 %vm591_vm0, %v592_v1  ;;  %v53_v3 = vld [vmem:[%s799_s1 + $0x8] sm:$0xff]  ;;  %v136_v5 = vld [vmem:[%s801_s3] sm:$0xff]  ;;  %v138_v7 = vld [vmem:[%s801_s3 + $0x10] sm:$0xff]  ;;  %vm61_vm1 = vcmask 130048   ;;  %s593_s18 = smov [#allocation7]   ;;  %vm323_vm2 = vcmask 58368  }
  0x29   :  { %462 = vmatprep.subr.bf16.mxu1 %v590_v0  ;;  %421 = vmatprep.mubr.msk.f32.mxu1 %vm591_vm0, %v592_v1  ;;  %v460_v4 = vpack.c.bf16 %v53_v3, %v52_v2  ;;  %v137_v6 = vld [vmem:[%s801_s3 + $0x8] sm:$0xff]  ;;  %v139_v9 = vld [vmem:[%s801_s3 + $0x18] sm:$0xff]  ;;  %v51_v10 = vld [vmem:[%s798_s0] sm:$0x3]  ;;  %s331_s0 = sshll.u32 %s593_s18, 4  ;;  %s332_s0 = int_to_ptr.vmem [resolvable:$true] %s331_s0 }
  0x2a   :  { %v463_v8 = vpack.c.bf16 %v137_v6, %v136_v5  ;;  %v466_v11 = vpack.c.bf16 %v139_v9, %v138_v7  ;;  %v140_v12 = vld [vmem:[%s801_s3 + $0x20] sm:$0xff]  ;;  %v141_v13 = vld [vmem:[%s801_s3 + $0x28] sm:$0xff]  ;;  %v142_v15 = vld [vmem:[%s801_s3 + $0x30] sm:$0xff]  ;;  %p565_p3 = scmp.lt.s32.totalorder %s332_s0, %s332_s0 }
  0x2b   :  { %461 = vmatpush3.bf16.msra.mxu0 %v460_v4  ;;  %v469_v14 = vpack.c.bf16 %v141_v13, %v140_v12  ;;  %v143_v16 = vld [vmem:[%s801_s3 + $0x38] sm:$0xff]  ;;  %v144_v18 = vld [vmem:[%s801_s3 + $0x40] sm:$0xff]  ;;  %v145_v19 = vld [vmem:[%s801_s3 + $0x48] sm:$0xff] }
  0x2c   :  { %464 = vmatpush3.bf16.msra.mxu1 %v463_v8  ;;  %486 = vmatprep.subr.bf16.mxu0 %v590_v0  ;;  %v472_v17 = vpack.c.bf16 %v143_v16, %v142_v15  ;;  %v475_v20 = vpack.c.bf16 %v145_v19, %v144_v18  ;;  %v146_v21 = vld [vmem:[%s801_s3 + $0x50] sm:$0xff]  ;;  %v147_v22 = vld [vmem:[%s801_s3 + $0x58] sm:$0xff]  ;;  %v148_v24 = vld [vmem:[%s801_s3 + $0x60] sm:$0xff] }
  0x2d   :  { %465 = vmatprep.subr.bf16.mxu1 %v590_v0  ;;  %v478_v23 = vpack.c.bf16 %v147_v22, %v146_v21  ;;  %v149_v25 = vld [vmem:[%s801_s3 + $0x68] sm:$0xff]  ;;  %v150_v27 = vld [vmem:[%s801_s3 + $0x70] sm:$0xff]  ;;  %v151_v28 = vld [vmem:[%s801_s3 + $0x78] sm:$0xff] }
  0x2e   :  { %387 = vmatmul.mubr.msk.f32.vlgmr.msra.gmra.mrb[0].mxu0 %vm61_vm1, %v51_v10  ;;  %v481_v26 = vpack.c.bf16 %v149_v25, %v148_v24  ;;  %v484_v29 = vpack.c.bf16 %v151_v28, %v150_v27  ;;  %v230_v30 = vld [vmem:[%s803_s5] sm:$0xff]  ;;  %v231_v31 = vld [vmem:[%s803_s5 + $0x8] sm:$0xff]  ;;  %v232_v32 = vld [vmem:[%s803_s5 + $0x10] sm:$0xff] }
  0x2f   :  { %456 = vmatprep.mubr.msk.f32.mxu0 %vm591_vm0, %v592_v1  ;;  %v487_v33 = vpack.c.bf16 %v231_v31, %v230_v30  ;;  %v233_v34 = vld [vmem:[%s803_s5 + $0x18] sm:$0xff]  ;;  %v234_v36 = vld [vmem:[%s803_s5 + $0x20] sm:$0xff]  ;;  %v235_v37 = vld [vmem:[%s803_s5 + $0x28] sm:$0xff] }
  0x30   :  { %467 = vmatpush3.bf16.msra.mxu1 %v466_v11  ;;  %v490_v35 = vpack.c.bf16 %v233_v34, %v232_v32  ;;  %v493_v38 = vpack.c.bf16 %v235_v37, %v234_v36  ;;  %v236_v39 = vld [vmem:[%s803_s5 + $0x30] sm:$0xff]  ;;  %v237_v40 = vld [vmem:[%s803_s5 + $0x38] sm:$0xff]  ;;  %v238_v42 = vld [vmem:[%s803_s5 + $0x40] sm:$0xff] }
  0x31   :  { %468 = vmatprep.subr.bf16.mxu1 %v590_v0  ;;  %488 = vmatpush3.bf16.msra.mxu0 %v487_v33  ;;  %v496_v41 = vpack.c.bf16 %v237_v40, %v236_v39  ;;  %v239_v43 = vld [vmem:[%s803_s5 + $0x48] sm:$0xff]  ;;  %v240_v45 = vld [vmem:[%s803_s5 + $0x50] sm:$0xff]  ;;  %v241_v46 = vld [vmem:[%s803_s5 + $0x58] sm:$0xff] }
  0x32   :  { %489 = vmatprep.subr.bf16.mxu0 %v590_v0  ;;  %v499_v44 = vpack.c.bf16 %v239_v43, %v238_v42  ;;  %v502_v47 = vpack.c.bf16 %v241_v46, %v240_v45  ;;  %v242_v48 = vld [vmem:[%s803_s5 + $0x60] sm:$0xff]  ;;  %v243_v49 = vld [vmem:[%s803_s5 + $0x68] sm:$0xff]  ;;  %v244_v56 = vld [vmem:[%s803_s5 + $0x70] sm:$0xff] }
  0x33   :  { %v505_v50 = vpack.c.bf16 %v243_v49, %v242_v48  ;;  %v341_v51 = vld [vmem:[#allocation2] ss:$0 sm:$0xff]  ;;  %v245_v57 = vld [vmem:[%s803_s5 + $0x78] sm:$0xff]  ;;  %v343_v59 = vld [vmem:[#allocation5] ss:$0 sm:$0xff]  ;;  %s560_s5 = scalar_lea.vmem %s332_s0, 32 }
  0x34   :  { %470 = vmatpush3.bf16.msra.mxu1 %v469_v14  ;;  %v508_v58 = vpack.c.bf16 %v245_v57, %v244_v56  ;;  %p561_p2 = scmp.ne.s32.totalorder %s332_s0, %s560_s5  ;;  %p566_p4 = scmp.lt.s32.totalorder %s560_s5, %s560_s5 }
  0x35   :  { %471 = vmatprep.subr.bf16.mxu1 %v590_v0  ;;  %491 = vmatpush3.bf16.msra.mxu0 %v490_v35 }
  0x36   :  { %492 = vmatprep.subr.bf16.mxu0 %v590_v0  ;;  %p567_p5 = por %p566_p4, %p565_p3 }
  0x38   :  { %473 = vmatpush3.bf16.msra.mxu1 %v472_v17  ;;  %p568_p6 = pnand %p567_p5, %p561_p2 }
  0x39   :  { %474 = vmatprep.subr.bf16.mxu1 %v590_v0  ;;  %494 = vmatpush3.bf16.msra.mxu0 %v493_v38 }
  0x3a   :  { %495 = vmatprep.subr.bf16.mxu0 %v590_v0 }
  0x3c   :  { %476 = vmatpush3.bf16.msra.mxu1 %v475_v20 }
  0x3d   :  { %477 = vmatprep.subr.bf16.mxu1 %v590_v0  ;;  %497 = vmatpush3.bf16.msra.mxu0 %v496_v41 }
  0x3e   :  { %498 = vmatprep.subr.bf16.mxu0 %v590_v0 }
  0x40   :  { %479 = vmatpush3.bf16.msra.mxu1 %v478_v23 }
  0x41   :  { %480 = vmatprep.subr.bf16.mxu1 %v590_v0  ;;  %500 = vmatpush3.bf16.msra.mxu0 %v499_v44 }
  0x42   :  { %501 = vmatprep.subr.bf16.mxu0 %v590_v0 }
  0x44   :  { %482 = vmatpush3.bf16.msra.mxu1 %v481_v26 }
  0x45   :  { %483 = vmatprep.subr.bf16.mxu1 %v590_v0  ;;  %503 = vmatpush3.bf16.msra.mxu0 %v502_v47 }
  0x46   :  { %504 = vmatprep.subr.bf16.mxu0 %v590_v0 }
  0x48   :  { %485 = vmatpush3.bf16.msra.mxu1 %v484_v29 }
  0x49   :  { %506 = vmatpush3.bf16.msra.mxu0 %v505_v50 }
  0x4a   :  { %507 = vmatprep.subr.bf16.mxu0 %v590_v0  ;;  %v344_v0 = vld [vmem:[%s804_s6] ss:$0 sm:$0xff] }
  0x4d   :  { %509 = vmatpush3.bf16.msra.mxu0 %v508_v58 }
 0x101   :  { %v131_v52 = vpop.f32.mrb[0].mxu0 }
 0x102   :  { %v132_v53 = vadd.f32 %v341_v51, %v131_v52  ;;  %v388_v54 = vpop.f32.mrb[1].mxu0 }
 0x104   :  { %v135_v55 = vmax.f32 %v132_v53, 0.0 }
 0x106   :  { %422 = vmatmul.mubr.f32.vlgmr.msra.gmra.mrb[0].mxu1 %v135_v55 }
 0x1d9   :  { %v225_v60 = vpop.f32.mrb[0].mxu1 }
 0x1da   :  { %v226_v61 = vadd.f32 %v343_v59, %v225_v60  ;;  %v423_v62 = vpop.f32.mrb[1].mxu1 }
 0x1dc   :  { %v229_v63 = vmax.f32 %v226_v61, 0.0 }
 0x1de   :  { %457 = vmatmul.mubr.f32.vlgmr.msra.gmra.mrb[2].mxu0 %v229_v63 }
 0x2b1   :  { %v319_v1 = vpop.f32.mrb[2].mxu0 }
 0x2b2   :  { %v320_v2 = vadd.f32 %v344_v0, %v319_v1  ;;  %v458_v3 = vpop.f32.mrb[3].mxu0 }
 0x2b4   :  { %324 = vst.msk [vmem:[#allocation7] sm:$0x3] %vm323_vm2, %v320_v2 }
 0x2b5   :  { %571 = shalt.err (!%p568_p6)
}
 0x2b6   :  { %s572_s20 = scalar_lea.hbm %s805_s7, 32 }
 0x2b7   :  { %p573_p7 = scmp.ne.s32.totalorder %s805_s7, %s572_s20  ;;  %p576_p8 = scmp.lt.u32.totalorder %s572_s20, %s805_s7 }
 0x2b9   :  { %p578_p9 = pnand %p576_p8, %p573_p7 }
 0x2bb   :  { %581 = shalt.err (!%p578_p9)
}
 0x2bc   :  { %334 = dma.vmem_to_hbm [thread:$0]  %s332_s0, 32, %s805_s7, [#allocation4]  }
 0x2bd   :  { %586 = dma.done.wait [#allocation4], 32  }
 0x2be   :  { %587 = vsyncadd [#allocation4], 4294967264 }
 0x2bf   :  { %338 = vsyncpa [#allocation3], 1 }
 0x2c0   :  { %339 = vsyncpa [#allocation6], 1 }
 0x2c1   :  { %340 = vsyncpa [#allocation4], 1 }

// kernel: tpu_custom_call.1
= control target key start
LH: loop header
LB: loop body
LE: loop exit
PB: predicated region body
PF: predicated region fallthrough
CT: control target
= control target key end

     0   :  { %12 = vsyncpa [#allocation3], 0  ;;  %s798_s0 = inlined_call_operand.vmem [shape: f32[2,16], index: 0, kind: input, shape index: {}]   ;;  %s799_s1 = inlined_call_operand.vmem [shape: f32[16,128], index: 1, kind: input, shape index: {}]   ;;  %s800_s2 = inlined_call_operand.hbm [shape: f32[1,128], index: 2, kind: input, shape index: {}]   ;;  %s801_s3 = inlined_call_operand.vmem [shape: f32[128,128], index: 3, kind: input, shape index: {}]   ;;  %s802_s4 = inlined_call_operand.hbm [shape: f32[1,128], index: 4, kind: input, shape index: {}]   ;;  %s803_s5 = inlined_call_operand.vmem [shape: f32[128,8], index: 5, kind: input, shape index: {}]   ;;  %s804_s6 = inlined_call_operand.vmem [shape: f32[1,8], index: 6, kind: input, shape index: {}]   ;;  %s805_s7 = inlined_call_operand.hbm [shape: f32[2,8], index: 7, kind: output, shape index: {}]  }
   0x1   :  { %13 = vsyncpa [#allocation6], 0 }
   0x2   :  { %14 = vsyncpa [#allocation4], 0  ;;  %s588_s24 = smov [#allocation2]   ;;  %s589_s26 = smov [#allocation5]  }
   0x3   :  { %s25_s25 = sshll.u32 %s588_s24, 4  ;;  %s37_s27 = sshll.u32 %s589_s26, 4  ;;  %s26_s25 = int_to_ptr.vmem [resolvable:$true] %s25_s25  ;;  %s38_s27 = int_to_ptr.vmem [resolvable:$true] %s37_s27 }
   0x4   :  { %s516_s30 = scalar_lea.hbm %s800_s2, 16 }
   0x5   :  { %p517_p0 = scmp.ne.s32.totalorder %s800_s2, %s516_s30  ;;  %p520_p1 = scmp.lt.u32.totalorder %s516_s30, %s800_s2 }
   0x7   :  { %p522_p2 = pnand %p520_p1, %p517_p0 }
   0x9   :  { %525 = shalt.err (!%p522_p2)
}
   0xa   :  { %s526_s12 = scalar_lea.vmem %s26_s25, 16  ;;  %s530_s13 = scalar_lea.vmem %s26_s25, 32 }
   0xb   :  { %p527_p3 = scmp.ne.s32.totalorder %s26_s25, %s526_s12  ;;  %p531_p4 = scmp.lt.s32.totalorder %s26_s25, %s26_s25 }
   0xc   :  { %p532_p5 = scmp.lt.s32.totalorder %s530_s13, %s526_s12 }
   0xe   :  { %p533_p6 = por %p532_p5, %p531_p4 }
  0x10   :  { %p534_p7 = pnand %p533_p6, %p527_p3 }
  0x12   :  { %537 = shalt.err (!%p534_p7)
}
  0x13   :  { %28 = dma.hbm_to_vmem [thread:$0]  %s800_s2, 16, %s26_s25, [#allocation3]  }
  0x14   :  { %s538_s18 = scalar_lea.hbm %s802_s4, 16 }
  0x15   :  { %p539_p8 = scmp.ne.s32.totalorder %s802_s4, %s538_s18  ;;  %p542_p9 = scmp.lt.u32.totalorder %s538_s18, %s802_s4 }
  0x17   :  { %p544_p10 = pnand %p542_p9, %p539_p8 }
  0x19   :  { %547 = shalt.err (!%p544_p10)
}
  0x1a   :  { %s548_s23 = scalar_lea.vmem %s38_s27, 16  ;;  %s552_s24 = scalar_lea.vmem %s38_s27, 32 }
  0x1b   :  { %p549_p11 = scmp.ne.s32.totalorder %s38_s27, %s548_s23  ;;  %p553_p12 = scmp.lt.s32.totalorder %s38_s27, %s38_s27 }
  0x1c   :  { %p554_p13 = scmp.lt.s32.totalorder %s552_s24, %s548_s23 }
  0x1e   :  { %p555_p0 = por %p554_p13, %p553_p12 }
  0x20   :  { %p556_p1 = pnand %p555_p0, %p549_p11 }
  0x22   :  { %559 = shalt.err (!%p556_p1)
}
  0x23   :  { %40 = dma.hbm_to_vmem [thread:$0]  %s802_s4, 16, %s38_s27, [#allocation6]  }
  0x24   :  { %582 = dma.done.wait [#allocation3], 16  }
  0x25   :  { %583 = vsyncadd [#allocation3], 4294967280 }
  0x26   :  { %584 = dma.done.wait [#allocation6], 16  }
  0x27   :  { %585 = vsyncadd [#allocation6], 4294967280  ;;  %v590_v0 = vmov 0.0|0.0   ;;  %vm591_vm0 = vmmov 0   ;;  %v592_v1 = vmov 0.0   ;;  %v52_v2 = vld [vmem:[%s799_s1] sm:$0xff] }
  0x28   :  { %459 = vmatprep.subr.bf16.mxu0 %v590_v0  ;;  %386 = vmatprep.mubr.msk.f32.mxu0 %vm591_vm0, %v592_v1  ;;  %v53_v3 = vld [vmem:[%s799_s1 + $0x8] sm:$0xff]  ;;  %v136_v5 = vld [vmem:[%s801_s3] sm:$0xff]  ;;  %v138_v7 = vld [vmem:[%s801_s3 + $0x10] sm:$0xff]  ;;  %vm61_vm1 = vcmask 130048   ;;  %s593_s18 = smov [#allocation7]   ;;  %vm323_vm2 = vcmask 58368  }
  0x29   :  { %462 = vmatprep.subr.bf16.mxu1 %v590_v0  ;;  %421 = vmatprep.mubr.msk.f32.mxu1 %vm591_vm0, %v592_v1  ;;  %v460_v4 = vpack.c.bf16 %v53_v3, %v52_v2  ;;  %v137_v6 = vld [vmem:[%s801_s3 + $0x8] sm:$0xff]  ;;  %v139_v9 = vld [vmem:[%s801_s3 + $0x18] sm:$0xff]  ;;  %v51_v10 = vld [vmem:[%s798_s0] sm:$0x3]  ;;  %s331_s0 = sshll.u32 %s593_s18, 4  ;;  %s332_s0 = int_to_ptr.vmem [resolvable:$true] %s331_s0 }
  0x2a   :  { %v463_v8 = vpack.c.bf16 %v137_v6, %v136_v5  ;;  %v466_v11 = vpack.c.bf16 %v139_v9, %v138_v7  ;;  %v140_v12 = vld [vmem:[%s801_s3 + $0x20] sm:$0xff]  ;;  %v141_v13 = vld [vmem:[%s801_s3 + $0x28] sm:$0xff]  ;;  %v142_v15 = vld [vmem:[%s801_s3 + $0x30] sm:$0xff]  ;;  %p565_p3 = scmp.lt.s32.totalorder %s332_s0, %s332_s0 }
  0x2b   :  { %461 = vmatpush3.bf16.msra.mxu0 %v460_v4  ;;  %v469_v14 = vpack.c.bf16 %v141_v13, %v140_v12  ;;  %v143_v16 = vld [vmem:[%s801_s3 + $0x38] sm:$0xff]  ;;  %v144_v18 = vld [vmem:[%s801_s3 + $0x40] sm:$0xff]  ;;  %v145_v19 = vld [vmem:[%s801_s3 + $0x48] sm:$0xff] }
  0x2c   :  { %464 = vmatpush3.bf16.msra.mxu1 %v463_v8  ;;  %486 = vmatprep.subr.bf16.mxu0 %v590_v0  ;;  %v472_v17 = vpack.c.bf16 %v143_v16, %v142_v15  ;;  %v475_v20 = vpack.c.bf16 %v145_v19, %v144_v18  ;;  %v146_v21 = vld [vmem:[%s801_s3 + $0x50] sm:$0xff]  ;;  %v147_v22 = vld [vmem:[%s801_s3 + $0x58] sm:$0xff]  ;;  %v148_v24 = vld [vmem:[%s801_s3 + $0x60] sm:$0xff] }
  0x2d   :  { %465 = vmatprep.subr.bf16.mxu1 %v590_v0  ;;  %v478_v23 = vpack.c.bf16 %v147_v22, %v146_v21  ;;  %v149_v25 = vld [vmem:[%s801_s3 + $0x68] sm:$0xff]  ;;  %v150_v27 = vld [vmem:[%s801_s3 + $0x70] sm:$0xff]  ;;  %v151_v28 = vld [vmem:[%s801_s3 + $0x78] sm:$0xff] }
  0x2e   :  { %387 = vmatmul.mubr.msk.f32.vlgmr.msra.gmra.mrb[0].mxu0 %vm61_vm1, %v51_v10  ;;  %v481_v26 = vpack.c.bf16 %v149_v25, %v148_v24  ;;  %v484_v29 = vpack.c.bf16 %v151_v28, %v150_v27  ;;  %v230_v30 = vld [vmem:[%s803_s5] sm:$0xff]  ;;  %v231_v31 = vld [vmem:[%s803_s5 + $0x8] sm:$0xff]  ;;  %v232_v32 = vld [vmem:[%s803_s5 + $0x10] sm:$0xff] }
  0x2f   :  { %456 = vmatprep.mubr.msk.f32.mxu0 %vm591_vm0, %v592_v1  ;;  %v487_v33 = vpack.c.bf16 %v231_v31, %v230_v30  ;;  %v233_v34 = vld [vmem:[%s803_s5 + $0x18] sm:$0xff]  ;;  %v234_v36 = vld [vmem:[%s803_s5 + $0x20] sm:$0xff]  ;;  %v235_v37 = vld [vmem:[%s803_s5 + $0x28] sm:$0xff] }
  0x30   :  { %467 = vmatpush3.bf16.msra.mxu1 %v466_v11  ;;  %v490_v35 = vpack.c.bf16 %v233_v34, %v232_v32  ;;  %v493_v38 = vpack.c.bf16 %v235_v37, %v234_v36  ;;  %v236_v39 = vld [vmem:[%s803_s5 + $0x30] sm:$0xff]  ;;  %v237_v40 = vld [vmem:[%s803_s5 + $0x38] sm:$0xff]  ;;  %v238_v42 = vld [vmem:[%s803_s5 + $0x40] sm:$0xff] }
  0x31   :  { %468 = vmatprep.subr.bf16.mxu1 %v590_v0  ;;  %488 = vmatpush3.bf16.msra.mxu0 %v487_v33  ;;  %v496_v41 = vpack.c.bf16 %v237_v40, %v236_v39  ;;  %v239_v43 = vld [vmem:[%s803_s5 + $0x48] sm:$0xff]  ;;  %v240_v45 = vld [vmem:[%s803_s5 + $0x50] sm:$0xff]  ;;  %v241_v46 = vld [vmem:[%s803_s5 + $0x58] sm:$0xff] }
  0x32   :  { %489 = vmatprep.subr.bf16.mxu0 %v590_v0  ;;  %v499_v44 = vpack.c.bf16 %v239_v43, %v238_v42  ;;  %v502_v47 = vpack.c.bf16 %v241_v46, %v240_v45  ;;  %v242_v48 = vld [vmem:[%s803_s5 + $0x60] sm:$0xff]  ;;  %v243_v49 = vld [vmem:[%s803_s5 + $0x68] sm:$0xff]  ;;  %v244_v56 = vld [vmem:[%s803_s5 + $0x70] sm:$0xff] }
  0x33   :  { %v505_v50 = vpack.c.bf16 %v243_v49, %v242_v48  ;;  %v341_v51 = vld [vmem:[#allocation2] ss:$0 sm:$0xff]  ;;  %v245_v57 = vld [vmem:[%s803_s5 + $0x78] sm:$0xff]  ;;  %v343_v59 = vld [vmem:[#allocation5] ss:$0 sm:$0xff]  ;;  %s560_s5 = scalar_lea.vmem %s332_s0, 32 }
  0x34   :  { %470 = vmatpush3.bf16.msra.mxu1 %v469_v14  ;;  %v508_v58 = vpack.c.bf16 %v245_v57, %v244_v56  ;;  %p561_p2 = scmp.ne.s32.totalorder %s332_s0, %s560_s5  ;;  %p566_p4 = scmp.lt.s32.totalorder %s560_s5, %s560_s5 }
  0x35   :  { %471 = vmatprep.subr.bf16.mxu1 %v590_v0  ;;  %491 = vmatpush3.bf16.msra.mxu0 %v490_v35 }
  0x36   :  { %492 = vmatprep.subr.bf16.mxu0 %v590_v0  ;;  %p567_p5 = por %p566_p4, %p565_p3 }
  0x38   :  { %473 = vmatpush3.bf16.msra.mxu1 %v472_v17  ;;  %p568_p6 = pnand %p567_p5, %p561_p2 }
  0x39   :  { %474 = vmatprep.subr.bf16.mxu1 %v590_v0  ;;  %494 = vmatpush3.bf16.msra.mxu0 %v493_v38 }
  0x3a   :  { %495 = vmatprep.subr.bf16.mxu0 %v590_v0 }
  0x3c   :  { %476 = vmatpush3.bf16.msra.mxu1 %v475_v20 }
  0x3d   :  { %477 = vmatprep.subr.bf16.mxu1 %v590_v0  ;;  %497 = vmatpush3.bf16.msra.mxu0 %v496_v41 }
  0x3e   :  { %498 = vmatprep.subr.bf16.mxu0 %v590_v0 }
  0x40   :  { %479 = vmatpush3.bf16.msra.mxu1 %v478_v23 }
  0x41   :  { %480 = vmatprep.subr.bf16.mxu1 %v590_v0  ;;  %500 = vmatpush3.bf16.msra.mxu0 %v499_v44 }
  0x42   :  { %501 = vmatprep.subr.bf16.mxu0 %v590_v0 }
  0x44   :  { %482 = vmatpush3.bf16.msra.mxu1 %v481_v26 }
  0x45   :  { %483 = vmatprep.subr.bf16.mxu1 %v590_v0  ;;  %503 = vmatpush3.bf16.msra.mxu0 %v502_v47 }
  0x46   :  { %504 = vmatprep.subr.bf16.mxu0 %v590_v0 }
  0x48   :  { %485 = vmatpush3.bf16.msra.mxu1 %v484_v29 }
  0x49   :  { %506 = vmatpush3.bf16.msra.mxu0 %v505_v50 }
  0x4a   :  { %507 = vmatprep.subr.bf16.mxu0 %v590_v0  ;;  %v344_v0 = vld [vmem:[%s804_s6] ss:$0 sm:$0xff] }
  0x4d   :  { %509 = vmatpush3.bf16.msra.mxu0 %v508_v58 }
 0x101   :  { %v131_v52 = vpop.f32.mrb[0].mxu0 }
 0x102   :  { %v132_v53 = vadd.f32 %v341_v51, %v131_v52  ;;  %v388_v54 = vpop.f32.mrb[1].mxu0 }
 0x104   :  { %v135_v55 = vmax.f32 %v132_v53, 0.0 }
 0x106   :  { %422 = vmatmul.mubr.f32.vlgmr.msra.gmra.mrb[0].mxu1 %v135_v55 }
 0x1d9   :  { %v225_v60 = vpop.f32.mrb[0].mxu1 }
 0x1da   :  { %v226_v61 = vadd.f32 %v343_v59, %v225_v60  ;;  %v423_v62 = vpop.f32.mrb[1].mxu1 }
 0x1dc   :  { %v229_v63 = vmax.f32 %v226_v61, 0.0 }
 0x1de   :  { %457 = vmatmul.mubr.f32.vlgmr.msra.gmra.mrb[2].mxu0 %v229_v63 }
 0x2b1   :  { %v319_v1 = vpop.f32.mrb[2].mxu0 }
 0x2b2   :  { %v320_v2 = vadd.f32 %v344_v0, %v319_v1  ;;  %v458_v3 = vpop.f32.mrb[3].mxu0 }
 0x2b4   :  { %324 = vst.msk [vmem:[#allocation7] sm:$0x3] %vm323_vm2, %v320_v2 }
 0x2b5   :  { %571 = shalt.err (!%p568_p6)
}
 0x2b6   :  { %s572_s20 = scalar_lea.hbm %s805_s7, 32 }
 0x2b7   :  { %p573_p7 = scmp.ne.s32.totalorder %s805_s7, %s572_s20  ;;  %p576_p8 = scmp.lt.u32.totalorder %s572_s20, %s805_s7 }
 0x2b9   :  { %p578_p9 = pnand %p576_p8, %p573_p7 }
 0x2bb   :  { %581 = shalt.err (!%p578_p9)
}
 0x2bc   :  { %334 = dma.vmem_to_hbm [thread:$0]  %s332_s0, 32, %s805_s7, [#allocation4]  }
 0x2bd   :  { %586 = dma.done.wait [#allocation4], 32  }
 0x2be   :  { %587 = vsyncadd [#allocation4], 4294967264 }
 0x2bf   :  { %338 = vsyncpa [#allocation3], 1 }
 0x2c0   :  { %339 = vsyncpa [#allocation6], 1 }
 0x2c1   :  { %340 = vsyncpa [#allocation4], 1 }

</bundles_post_ra>
